<compile_context>
chip_gen: v6e
topology: v6e:2x2x1
jax: 0.10.0
libtpu: 0.0.40
codegen_flags: <defaults>
</compile_context>

<pallas_src>
import numpy as np
import jax
import jax.numpy as jnp
from jax.experimental import pallas as pl
from jax.experimental.pallas import tpu as pltpu

N_WIRES = 4
DIM = 2 ** N_WIRES            # 16
VEC = 2 * DIM * DIM           # 512 (dilated real state length: [Re; Im] row-major)
T_FINAL = 1.0                 # EquilibriumModel.t
N_RK_STEPS = 64               # TODO(synk): fixed-step RK4 replaces torchdiffeq dopri5

_VMEM = pl.BlockSpec(memory_space=pltpu.MemorySpace.VMEM)


# ------------------------------ Pallas kernels ------------------------------ #

def _propagator_kernel(rho_vec_ref, propt_ref, out_ref):
    """[z1 | pred] = vec(rho0)^T @ [M^64 | M^128]^T  -- one lane-dense matmul."""
    out_ref[...] = jnp.dot(rho_vec_ref[...], propt_ref[...],
                           preferred_element_type=jnp.float32)


def _img_filter_kernel(x_ref, at_ref, o_ref):
    """avg_pool2d(x, 6) for a tile of flattened images: (TILE_N,576)@(576,16)."""
    o_ref[...] = jnp.dot(x_ref[...], at_ref[...],
                         preferred_element_type=jnp.float32)


# --------------------------- pallas_call wrappers --------------------------- #

@jax.jit
def _thermal_forward(gates_l, propt):
    """circuit (XLA pre-multiply) -> rho0 ; one propagator kernel -> z1, pred."""
    # Pre-multiply the gate chain outside the kernel (still differentiable):
    # 11 tiny 32x32 matmuls instead of 23 one-lane-wide in-kernel MXU pushes.
    n_gates = gates_l.shape[0]
    u = gates_l[0]
    for l in range(1, n_gates):
        u = jnp.dot(gates_l[l], u)
    psi = u[:, 0]                                  # stacked [Re; Im] of G...G|0..0>
    pr, pi = psi[:DIM], psi[DIM:]
    # rho0 = psi psi^dag as a pure outer product (VPU work in XLA).
    rho_r = pr[:, None] * pr[None, :] + pi[:, None] * pi[None, :]
    rho_i = pi[:, None] * pr[None, :] - pr[:, None] * pi[None, :]
    rho0_vec = jnp.concatenate([rho_r.reshape(-1), rho_i.reshape(-1)])[None, :]

    flops = 2 * VEC * (2 * VEC)
    bytes_acc = 4 * (VEC + VEC * 2 * VEC + 2 * VEC)
    packed = pl.pallas_call(
        _propagator_kernel,
        out_shape=jax.ShapeDtypeStruct((1, 2 * VEC), jnp.float32),
        in_specs=[_VMEM, _VMEM],
        out_specs=_VMEM,
        cost_estimate=pl.CostEstimate(flops=int(flops), transcendentals=0,
                                      bytes_accessed=int(bytes_acc)),
    )(rho0_vec, propt)

    z1_vec = packed[0, :VEC]       # EquilibriumModel(rho0)
    pred_vec = packed[0, VEC:]     # EquilibriumModel(hidden)

    # _forward()'s residual (overwritten by the loss in forward(), kept for parity)
    pre_residual = (jnp.linalg.norm(rho0_vec[0] - z1_vec)
                    / (jnp.linalg.norm(z1_vec) + 1e-9))
    # state_loss(pred, hidden): 0.5 * nuclear norm of the complex difference.
    # Real embedding [[A,-B],[B,A]] duplicates each singular value -> 0.25*sum.
    dz = pred_vec - z1_vec
    A = dz[:DIM * DIM].reshape(DIM, DIM)
    B = dz[DIM * DIM:].reshape(DIM, DIM)
    R = jnp.block([[A, -B], [B, A]])
    s = jnp.linalg.svd(R, compute_uv=False)
    loss = 0.25 * jnp.sum(s)
    core_out = z1_vec.reshape(1, -1)               # (1, 512)
    return loss, pre_residual, core_out


# ------------------------- operator / gate construction --------------------- #

_I2 = np.eye(2, dtype=np.complex128)
_SX = np.array([[0., 1.], [1., 0.]], dtype=np.complex128)
_SZ = np.array([[1., 0.], [0., -1.]], dtype=np.complex128)
_SP = np.array([[0., 1.], [0., 0.]], dtype=np.complex128)    # qt.sigmap()
_SM = np.array([[0., 0.], [1., 0.]], dtype=np.complex128)    # qt.sigmam()
_HAD = np.array([[1., 1.], [1., -1.]], dtype=np.complex128) / np.sqrt(2.0)
_SXGATE = 0.5 * np.array([[1. + 1j, 1. - 1j], [1. - 1j, 1. + 1j]],
                         dtype=np.complex128)
_P0 = np.array([[1., 0.], [0., 0.]], dtype=np.complex128)
_P1 = np.array([[0., 0.], [0., 1.]], dtype=np.complex128)


def _rx(theta):
    c, s = np.cos(theta / 2.0), np.sin(theta / 2.0)
    return np.array([[c, -1j * s], [-1j * s, c]], dtype=np.complex128)


def _ry(theta):
    c, s = np.cos(theta / 2.0), np.sin(theta / 2.0)
    return np.array([[c, -s], [s, c]], dtype=np.complex128)


def _rz(theta):
    return np.array([[np.exp(-1j * theta / 2.0), 0.0],
                     [0.0, np.exp(1j * theta / 2.0)]], dtype=np.complex128)


def _embed(ops_by_wire):
    """kron over wires, wire 0 most significant."""
    mat = None
    for w in range(N_WIRES):
        op = ops_by_wire.get(w, _I2)
        mat = op if mat is None else np.kron(mat, op)
    return mat


def _controlled(gate2, control, target):
    return _embed({control: _P0}) + _embed({control: _P1, target: gate2})


def _embed_lhs(A):
    """Real 2x2 block embedding for left multiplication: [[Ar,-Ai],[Ai,Ar]]."""
    Ar, Ai = np.real(A), np.imag(A)
    return np.block([[Ar, -Ai], [Ai, Ar]]).astype(np.float32)


def build_circuit_gates():
    """Deterministic gate list: left-embedded stack + complex total unitary."""
    angles = np.asarray(jax.random.uniform(jax.random.PRNGKey(0), (8,),
                                           minval=0.0, maxval=2.0 * np.pi))
    gates = []
    # TODO(synk): tq.RandomLayer(n_ops=50) samples random ops; replaced by a
    # deterministic RY-per-wire layer so the kernel is reproducible.
    for w in range(N_WIRES):
        gates.append(_embed({w: _ry(angles[w])}))
    gates.append(_embed({0: _rx(angles[4])}))                  # rx0, wire 0
    gates.append(_embed({1: _ry(angles[5])}))                  # ry0, wire 1
    gates.append(_embed({3: _rz(angles[6])}))                  # rz0, wire 3
    gates.append(_controlled(_rx(angles[7]), 0, 2))            # crx0, wires [0,2]
    gates.append(_embed({3: _HAD}))                            # h, wire 3
    gates.append(_embed({2: _SXGATE}))                         # sx, wire 2
    gates.append(_controlled(_SX, 3, 0))                       # cnot, wires [3,0]
    gates.append(_embed({1: _rx(0.1)}))                        # rx(0.1), wire 1
    g_l = np.stack([_embed_lhs(g) for g in gates], axis=0)     # (12, 32, 32)
    u_total = gates[0]
    for g in gates[1:]:
        u_total = g @ u_total
    return jnp.asarray(g_l), u_total


def build_lindblad_superop():
    """Real 512x512 generator L acting on vec = [Re(rho).ravel(); Im(rho).ravel()].

    rhs = -i(H_eff rho - rho H_eff^dag) + sum_k n_k rho n_k^dag, with
    H_eff = H - (i/2) sum_k n_k^dag n_k (the standard Lindblad form).
    """
    J, h = 1.0, 0.5
    H = np.zeros((DIM, DIM), dtype=np.complex128)
    for i in range(N_WIRES):
        H += h * _embed({i: _SX})
        H += J * _embed({i: _SZ, (i + 1) % N_WIRES: _SZ})
    beta = 1.0 / 50.0
    # TODO(synk): collapse operators scaled by rate (not sqrt(rate)) to match the
    # original model's convention.
    noise = [0.1 * np.exp(-beta) * _embed({i: _SP}) for i in range(N_WIRES)]
    noise += [0.1 * _embed({i: _SM}) for i in range(N_WIRES)]
    S = sum(op.conj().T @ op for op in noise)
    Heff = H - 0.5j * S
    eye = np.eye(DIM, dtype=np.complex128)
    # Row-major vectorization identity: vec(A X B) = (A (x) B^T) vec(X).
    Lc = -1j * np.kron(Heff, eye) + 1j * np.kron(eye, Heff.conj())
    for op in noise:
        Lc += np.kron(op, op.conj())
    # Real form for the [Re; Im] stacked vec layout.
    return np.block([[Lc.real, -Lc.imag], [Lc.imag, Lc.real]])   # (512, 512)


def build_propagator(l_real):
    """[M^64 | M^128]^T where M is the exact RK4 one-step matrix of vec' = L vec."""
    dt = T_FINAL / N_RK_STEPS
    eye = np.eye(VEC)
    l2 = l_real @ l_real
    m_step = (eye + dt * l_real + (dt ** 2 / 2.0) * l2
              + (dt ** 3 / 6.0) * (l2 @ l_real) + (dt ** 4 / 24.0) * (l2 @ l2))
    m64 = np.linalg.matrix_power(m_step, N_RK_STEPS)   # repeated squaring, float64
    m128 = m64 @ m64
    propt = np.concatenate([m64.T, m128.T], axis=1).astype(np.float32)
    return jnp.asarray(propt)                          # (512, 1024)


# --------------------------------- the models -------------------------------- #

class ImgFilterPallas:
    """Pallas version of ImgFilter.forward: avg_pool2d(x, 6) -> (N, 1, 16).

    TODO(synk): the nn.Sequential conv/batchnorm stack in ImgFilter.__init__ is
    dead code in the reference forward() and is not translated.
    """
    _POOL = 6

    def __init__(self, h=24, w=24):
        assert h % self._POOL == 0 and w % self._POOL == 0
        self.h, self.w = h, w
        self.oh, self.ow = h // self._POOL, w // self._POOL
        a = np.zeros((self.oh * self.ow, h * w), np.float32)
        inv = 1.0 / float(self._POOL * self._POOL)
        for i in range(self.oh):
            for j in range(self.ow):
                for dh in range(self._POOL):
                    for dw in range(self._POOL):
                        a[i * self.ow + j,
                          (self._POOL * i + dh) * w + (self._POOL * j + dw)] = inv
        self.at = jnp.asarray(a.T)       # (576, 16) pooling matrix

    def __call__(self, x):
        n, c, h, w = x.shape
        assert c == 1 and h == self.h and w == self.w
        hw, of = h * w, self.oh * self.ow
        xf = x.reshape(n, hw).astype(jnp.float32)
        # Tile many images per grid step (sublane-dense); pad N to the tile.
        tile_n = 128 if n >= 128 else 8 * pl.cdiv(n, 8)
        padded = tile_n * pl.cdiv(n, tile_n)
        if padded != n:
            xf = jnp.pad(xf, ((0, padded - n), (0, 0)))
        pooled = pl.pallas_call(
            _img_filter_kernel,
            out_shape=jax.ShapeDtypeStruct((padded, of), jnp.float32),
            grid=(padded // tile_n,),
            in_specs=[
                pl.BlockSpec((tile_n, hw), lambda i: (i, 0)),
                pl.BlockSpec((hw, of), lambda i: (0, 0)),
            ],
            out_specs=pl.BlockSpec((tile_n, of), lambda i: (i, 0)),
            compiler_params=pltpu.CompilerParams(
                dimension_semantics=("parallel",)),
        )(xf, self.at)
        return pooled[:n].reshape(n, 1, of)


class QDEQCircuitThermalPallas:
    """Pallas/JAX re-implementation of QDEQCircuit_Thermal (dataset='thermal')."""

    def __init__(self, n_layer=2, mode='direct'):
        # TODO(synk): 'implicit' mode needs the external `anderson` fixed-point
        # solver; only the 'direct' path (z = evolution(func())) is implemented.
        assert mode == 'direct' and n_layer >= 1
        self.n_layer = n_layer
        self.dim = DIM
        self.gates_l, self.u_total = build_circuit_gates()
        self.l_real = build_lindblad_superop()
        self.propt = build_propagator(self.l_real)

    def forward(self, data, target, mems=None, **kwargs):
        del data, target, mems, kwargs   # 'thermal' path ignores the image input
        # NOTE: the original n_layer loop recomputes evolution(func()) with an
        # identical result every iteration and discards the previous z1s, so it
        # is hoisted into a single call (same forward semantics).
        loss, _pre_residual, _core_out = _thermal_forward(self.gates_l, self.propt)
        jac_loss = jnp.zeros((1, 1), jnp.float32)
        sradius = jnp.zeros((1, 1), jnp.float32)
        residual = loss                  # dataset == 'thermal' sets residual = loss
        acc = 1.1
        return [loss, acc, residual, jac_loss, sradius]


if __name__ == "__main__":
    key = jax.random.PRNGKey(0)
    # data is NCHW (ImgFilter layout); the thermal model ignores it.
    data = jax.random.normal(key, (2, 1, 24, 24), jnp.float32)
    target = jnp.zeros((2,), jnp.int32)

    # --- ImgFilter (the literal module spec) --------------------------------
    img_filter = ImgFilterPallas()
    feats = jax.block_until_ready(img_filter(data))
    assert feats.shape == (2, 1, 16)
    ref = data.reshape(2, 1, 4, 6, 4, 6).mean(axis=(3, 5)).reshape(2, 1, 16)
    assert bool(jnp.allclose(feats, ref, atol=1e-4)), "ImgFilter mismatch"

    # --- Fused thermal QDEQ forward ------------------------------------------
    model = QDEQCircuitThermalPallas(n_layer=2)
    loss, acc, residual, jac_loss, sradius = model.forward(data, target, mems=None)
    loss = jax.block_until_ready(loss)
    jax.block_until_ready(residual)
    jax.block_until_ready(jac_loss)
    jax.block_until_ready(sradius)
    assert jac_loss.shape == (1, 1) and sradius.shape == (1, 1)
    assert bool(jnp.isfinite(loss)), "non-finite loss"

    # --- Propagator vs stepwise-RK4 tolerance check (float64 reference) ------
    _, _, core_out = _thermal_forward(model.gates_l, model.propt)
    core_out = np.asarray(jax.block_until_ready(core_out))[0]
    psi = model.u_total[:, 0]
    rho0 = np.outer(psi, psi.conj())
    v = np.concatenate([rho0.real.ravel(), rho0.imag.ravel()])
    dt = T_FINAL / N_RK_STEPS
    L = model.l_real
    for _ in range(N_RK_STEPS):
        k1 = L @ v
        k2 = L @ (v + 0.5 * dt * k1)
        k3 = L @ (v + 0.5 * dt * k2)
        k4 = L @ (v + dt * k3)
        v = v + (dt / 6.0) * (k1 + 2.0 * k2 + 2.0 * k3 + k4)
    assert np.max(np.abs(core_out - v)) < 5e-4, "propagator mismatch vs RK4 reference"

    print("KERNEL_OK")
</pallas_src>

<mosaic_0001>
module attributes {stable_mosaic.version = 11 : i64} {
  func.func @_img_filter_kernel(%arg0: i32, %arg1: memref<8x576xf32, #tpu.memory_space<vmem>>, %arg2: memref<576x16xf32, #tpu.memory_space<vmem>>, %arg3: memref<8x16xf32, #tpu.memory_space<vmem>>) attributes {dimension_semantics = [#tpu.dimension_semantics<parallel>], iteration_bounds = array<i64: 1>, scalar_prefetch = 0 : i64, scratch_operands = 0 : i64, tpu.core_type = #tpu.core_type<tc>, window_params = [{transform_indices = @transform_0, window_bounds = array<i64: 8, 576>}, {pipeline_mode = #tpu.pipeline_mode<synchronous>, transform_indices = @transform_1, window_bounds = array<i64: 576, 16>}, {transform_indices = @transform_2, window_bounds = array<i64: 8, 16>}]} {
    %c0 = arith.constant 0 : index
    %c0_0 = arith.constant 0 : index
    %0 = vector.load %arg1[%c0, %c0_0] : memref<8x576xf32, #tpu.memory_space<vmem>>, vector<8x576xf32>
    %c0_1 = arith.constant 0 : index
    %c0_2 = arith.constant 0 : index
    %1 = vector.load %arg2[%c0_1, %c0_2] : memref<576x16xf32, #tpu.memory_space<vmem>>, vector<576x16xf32>
    %cst = arith.constant dense<0.000000e+00> : vector<8x16xf32>
    %2 = tpu.matmul %0, %1, %cst {dimension_numbers = #tpu.dot_dimension_numbers<[1], [0], [0], [1], [0, 0, 1, 1], [], []>} : vector<8x576xf32>, vector<576x16xf32>, vector<8x16xf32> -> vector<8x16xf32>
    %c0_3 = arith.constant 0 : index
    %c0_4 = arith.constant 0 : index
    %3 = vector.load %arg3[%c0_3, %c0_4] : memref<8x16xf32, #tpu.memory_space<vmem>>, vector<8x16xf32>
    tpu.vector_store %arg3[%c0_3, %c0_4], %2 {strides = array<i32>} : memref<8x16xf32, #tpu.memory_space<vmem>>, vector<8x16xf32>,
    return
  }
  func.func @transform_0(%arg0: i32) -> (i32, i32) {
    %c0_i32 = arith.constant 0 : i32
    %c0_i32_0 = arith.constant 0 : i32
    return %arg0, %c0_i32 : i32, i32
  }
  func.func @transform_1(%arg0: i32) -> (i32, i32) {
    %c0_i32 = arith.constant 0 : i32
    %c0_i32_0 = arith.constant 0 : i32
    %c0_i32_1 = arith.constant 0 : i32
    return %c0_i32, %c0_i32_0 : i32, i32
  }
  func.func @transform_2(%arg0: i32) -> (i32, i32) {
    %c0_i32 = arith.constant 0 : i32
    %c0_i32_0 = arith.constant 0 : i32
    return %arg0, %c0_i32 : i32, i32
  }
}

</mosaic_0001>

<bundles_post_ra>
// kernel: tpu_custom_call.1
= control target key start
LH: loop header
LB: loop body
LE: loop exit
PB: predicated region body
PF: predicated region fallthrough
CT: control target
= control target key end

     0   :  { %s695_s0 = inlined_call_operand.vmem [shape: f32[8,576], index: 0, kind: input, shape index: {}]   ;;  %s696_s1 = inlined_call_operand.vmem [shape: f32[576,16], index: 1, kind: input, shape index: {}]   ;;  %s697_s2 = inlined_call_operand.hbm [shape: f32[8,16], index: 2, kind: output, shape index: {}]  }
   0x1   :  { %v48_v0 = vld [vmem:[%s696_s1 + $0xf8] sm:$0xff]  ;;  %v47_v4 = vld [vmem:[%s696_s1 + $0xf0] sm:$0xff]  ;;  %v46_v8 = vld [vmem:[%s696_s1 + $0xe8] sm:$0xff] }
   0x2   :  { %v80_v1 = vld [vmem:[%s696_s1 + $0x1f8] sm:$0xff]  ;;  %320 = vmatprep.subr.mxu0 %v48_v0  ;;  %v79_v5 = vld [vmem:[%s696_s1 + $0x1f0] sm:$0xff]  ;;  %v78_v9 = vld [vmem:[%s696_s1 + $0x1e8] sm:$0xff] }
   0x3   :  { %v32_v2 = vld [vmem:[%s696_s1 + $0x78] sm:$0xff]  ;;  %355 = vmatprep.subr.mxu1 %v80_v1  ;;  %v31_v6 = vld [vmem:[%s696_s1 + $0x70] sm:$0xff]  ;;  %v30_v10 = vld [vmem:[%s696_s1 + $0x68] sm:$0xff] }
   0x4   :  { %v64_v3 = vld [vmem:[%s696_s1 + $0x178] sm:$0xff]  ;;  %321 = vmatpush3.msra.mxu0 %v32_v2  ;;  %v63_v7 = vld [vmem:[%s696_s1 + $0x170] sm:$0xff]  ;;  %v62_v11 = vld [vmem:[%s696_s1 + $0x168] sm:$0xff] }
   0x5   :  { %356 = vmatpush3.msra.mxu1 %v64_v3  ;;  %322 = vmatprep.subr.mxu0 %v47_v4  ;;  %v45_v12 = vld [vmem:[%s696_s1 + $0xe0] sm:$0xff]  ;;  %v44_v16 = vld [vmem:[%s696_s1 + $0xd8] sm:$0xff]  ;;  %v43_v20 = vld [vmem:[%s696_s1 + $0xd0] sm:$0xff] }
   0x6   :  { %357 = vmatprep.subr.mxu1 %v79_v5  ;;  %323 = vmatpush3.msra.mxu0 %v31_v6  ;;  %v77_v13 = vld [vmem:[%s696_s1 + $0x1e0] sm:$0xff]  ;;  %v76_v17 = vld [vmem:[%s696_s1 + $0x1d8] sm:$0xff]  ;;  %v75_v21 = vld [vmem:[%s696_s1 + $0x1d0] sm:$0xff] }
   0x7   :  { %358 = vmatpush3.msra.mxu1 %v63_v7  ;;  %324 = vmatprep.subr.mxu0 %v46_v8  ;;  %v29_v14 = vld [vmem:[%s696_s1 + $0x60] sm:$0xff]  ;;  %v28_v18 = vld [vmem:[%s696_s1 + $0x58] sm:$0xff]  ;;  %v27_v22 = vld [vmem:[%s696_s1 + $0x50] sm:$0xff] }
   0x8   :  { %359 = vmatprep.subr.mxu1 %v78_v9  ;;  %v61_v15 = vld [vmem:[%s696_s1 + $0x160] sm:$0xff]  ;;  %325 = vmatpush3.msra.mxu0 %v30_v10  ;;  %v60_v19 = vld [vmem:[%s696_s1 + $0x158] sm:$0xff]  ;;  %v59_v23 = vld [vmem:[%s696_s1 + $0x150] sm:$0xff] }
   0x9   :  { %360 = vmatpush3.msra.mxu1 %v62_v11  ;;  %326 = vmatprep.subr.mxu0 %v45_v12  ;;  %v42_v24 = vld [vmem:[%s696_s1 + $0xc8] sm:$0xff]  ;;  %v41_v28 = vld [vmem:[%s696_s1 + $0xc0] sm:$0xff]  ;;  %v40_v32 = vld [vmem:[%s696_s1 + $0xb8] sm:$0xff] }
   0xa   :  { %361 = vmatprep.subr.mxu1 %v77_v13  ;;  %327 = vmatpush3.msra.mxu0 %v29_v14  ;;  %v74_v25 = vld [vmem:[%s696_s1 + $0x1c8] sm:$0xff]  ;;  %v73_v29 = vld [vmem:[%s696_s1 + $0x1c0] sm:$0xff]  ;;  %v72_v33 = vld [vmem:[%s696_s1 + $0x1b8] sm:$0xff] }
   0xb   :  { %362 = vmatpush3.msra.mxu1 %v61_v15  ;;  %328 = vmatprep.subr.mxu0 %v44_v16  ;;  %v26_v26 = vld [vmem:[%s696_s1 + $0x48] sm:$0xff]  ;;  %v25_v30 = vld [vmem:[%s696_s1 + $0x40] sm:$0xff]  ;;  %v24_v34 = vld [vmem:[%s696_s1 + $0x38] sm:$0xff] }
   0xc   :  { %363 = vmatprep.subr.mxu1 %v76_v17  ;;  %329 = vmatpush3.msra.mxu0 %v28_v18  ;;  %v58_v27 = vld [vmem:[%s696_s1 + $0x148] sm:$0xff]  ;;  %v57_v31 = vld [vmem:[%s696_s1 + $0x140] sm:$0xff]  ;;  %v56_v35 = vld [vmem:[%s696_s1 + $0x138] sm:$0xff] }
   0xd   :  { %364 = vmatpush3.msra.mxu1 %v60_v19  ;;  %330 = vmatprep.subr.mxu0 %v43_v20  ;;  %v39_v36 = vld [vmem:[%s696_s1 + $0xb0] sm:$0xff]  ;;  %v38_v40 = vld [vmem:[%s696_s1 + $0xa8] sm:$0xff]  ;;  %v37_v44 = vld [vmem:[%s696_s1 + $0xa0] sm:$0xff] }
   0xe   :  { %365 = vmatprep.subr.mxu1 %v75_v21  ;;  %331 = vmatpush3.msra.mxu0 %v27_v22  ;;  %v71_v37 = vld [vmem:[%s696_s1 + $0x1b0] sm:$0xff]  ;;  %v70_v41 = vld [vmem:[%s696_s1 + $0x1a8] sm:$0xff]  ;;  %v69_v45 = vld [vmem:[%s696_s1 + $0x1a0] sm:$0xff] }
   0xf   :  { %366 = vmatpush3.msra.mxu1 %v59_v23  ;;  %332 = vmatprep.subr.mxu0 %v42_v24  ;;  %v23_v38 = vld [vmem:[%s696_s1 + $0x30] sm:$0xff]  ;;  %v22_v42 = vld [vmem:[%s696_s1 + $0x28] sm:$0xff]  ;;  %v21_v46 = vld [vmem:[%s696_s1 + $0x20] sm:$0xff] }
  0x10   :  { %367 = vmatprep.subr.mxu1 %v74_v25  ;;  %333 = vmatpush3.msra.mxu0 %v26_v26  ;;  %v55_v39 = vld [vmem:[%s696_s1 + $0x130] sm:$0xff]  ;;  %v54_v43 = vld [vmem:[%s696_s1 + $0x128] sm:$0xff]  ;;  %v53_v47 = vld [vmem:[%s696_s1 + $0x120] sm:$0xff] }
  0x11   :  { %368 = vmatpush3.msra.mxu1 %v58_v27  ;;  %334 = vmatprep.subr.mxu0 %v41_v28  ;;  %v36_v48 = vld [vmem:[%s696_s1 + $0x98] sm:$0xff]  ;;  %v35_v52 = vld [vmem:[%s696_s1 + $0x90] sm:$0xff] }
  0x12   :  { %369 = vmatprep.subr.mxu1 %v73_v29  ;;  %335 = vmatpush3.msra.mxu0 %v25_v30  ;;  %v68_v49 = vld [vmem:[%s696_s1 + $0x198] sm:$0xff]  ;;  %v67_v53 = vld [vmem:[%s696_s1 + $0x190] sm:$0xff] }
  0x13   :  { %370 = vmatpush3.msra.mxu1 %v57_v31  ;;  %336 = vmatprep.subr.mxu0 %v40_v32  ;;  %v20_v50 = vld [vmem:[%s696_s1 + $0x18] sm:$0xff]  ;;  %v19_v54 = vld [vmem:[%s696_s1 + $0x10] sm:$0xff] }
  0x14   :  { %371 = vmatprep.subr.mxu1 %v72_v33  ;;  %337 = vmatpush3.msra.mxu0 %v24_v34  ;;  %v52_v51 = vld [vmem:[%s696_s1 + $0x118] sm:$0xff]  ;;  %v51_v55 = vld [vmem:[%s696_s1 + $0x110] sm:$0xff] }
  0x15   :  { %372 = vmatpush3.msra.mxu1 %v56_v35  ;;  %338 = vmatprep.subr.mxu0 %v39_v36 }
  0x16   :  { %373 = vmatprep.subr.mxu1 %v71_v37  ;;  %339 = vmatpush3.msra.mxu0 %v23_v38 }
  0x17   :  { %374 = vmatpush3.msra.mxu1 %v55_v39  ;;  %340 = vmatprep.subr.mxu0 %v38_v40 }
  0x18   :  { %375 = vmatprep.subr.mxu1 %v70_v41  ;;  %341 = vmatpush3.msra.mxu0 %v22_v42 }
  0x19   :  { %376 = vmatpush3.msra.mxu1 %v54_v43  ;;  %342 = vmatprep.subr.mxu0 %v37_v44 }
  0x1a   :  { %377 = vmatprep.subr.mxu1 %v69_v45  ;;  %343 = vmatpush3.msra.mxu0 %v21_v46 }
  0x1b   :  { %378 = vmatpush3.msra.mxu1 %v53_v47  ;;  %344 = vmatprep.subr.mxu0 %v36_v48 }
  0x1c   :  { %379 = vmatprep.subr.mxu1 %v68_v49 }
  0x1d   :  { %7 = vsyncpa [#allocation3], 0  ;;  %345 = vmatpush3.msra.mxu0 %v20_v50  ;;  %380 = vmatpush3.msra.mxu1 %v52_v51  ;;  %v34_v56 = vld [vmem:[%s696_s1 + $0x88] sm:$0xff]  ;;  %v33_v60 = vld [vmem:[%s696_s1 + $0x80] sm:$0xff]  ;;  %v443_v5 = vmov 0.0   ;;  %vm444_vm0 = vmmov 0  }
  0x1e   :  { %v66_v57 = vld [vmem:[%s696_s1 + $0x188] sm:$0xff]  ;;  %346 = vmatprep.subr.mxu0 %v35_v52  ;;  %381 = vmatprep.subr.mxu1 %v67_v53  ;;  %v65_v61 = vld [vmem:[%s696_s1 + $0x180] sm:$0xff]  ;;  %v15_v1 = vld [vmem:[%s695_s0 + $0x18] sm:$0xff]  ;;  %vm89_vm1 = vcmask 523264   ;;  %s445_s23 = smov [#allocation2]   ;;  %vm303_vm2 = vcmask 130048  }
  0x1f   :  { %v18_v58 = vld [vmem:[%s696_s1 + $0x8] sm:$0xff]  ;;  %347 = vmatpush3.msra.mxu0 %v19_v54  ;;  %382 = vmatpush3.msra.mxu1 %v51_v55  ;;  %v17_v62 = vld [vmem:[%s696_s1] sm:$0xff]  ;;  %v14_v3 = vld [vmem:[%s695_s0 + $0x10] sm:$0xff]  ;;  %s311_s24 = sshll.u32 %s445_s23, 4  ;;  %s312_s24 = int_to_ptr.vmem [resolvable:$true] %s311_s24 }
  0x20   :  { %v50_v59 = vld [vmem:[%s696_s1 + $0x108] sm:$0xff]  ;;  %348 = vmatprep.subr.mxu0 %v34_v56  ;;  %383 = vmatprep.subr.mxu1 %v66_v57  ;;  %v49_v0 = vld [vmem:[%s696_s1 + $0x100] sm:$0xff]  ;;  %v88_v4 = vld [vmem:[%s696_s1 + $0x238] sm:$0xff]  ;;  %p426_p1 = scmp.lt.s32.totalorder %s312_s24, %s312_s24 }
  0x21   :  { %v13_v63 = vld [vmem:[%s695_s0 + $0x8] sm:$0xff]  ;;  %349 = vmatpush3.msra.mxu0 %v18_v58  ;;  %384 = vmatpush3.msra.mxu1 %v50_v59  ;;  %v12_v2 = vld [vmem:[%s695_s0] sm:$0xff]  ;;  %v87_v6 = vld [vmem:[%s696_s1 + $0x230] sm:$0xff] }
  0x22   :  { %350 = vmatprep.subr.mxu0 %v33_v60  ;;  %385 = vmatprep.subr.mxu1 %v65_v61  ;;  %v86_v7 = vld [vmem:[%s696_s1 + $0x228] sm:$0xff]  ;;  %v85_v8 = vld [vmem:[%s696_s1 + $0x220] sm:$0xff]  ;;  %v84_v9 = vld [vmem:[%s696_s1 + $0x218] sm:$0xff] }
  0x23   :  { %351 = vmatpush3.msra.mxu0 %v17_v62  ;;  %157 = vmatprep.mubr.f32.mxu0 %v13_v63  ;;  %v83_v10 = vld [vmem:[%s696_s1 + $0x210] sm:$0xff]  ;;  %v82_v11 = vld [vmem:[%s696_s1 + $0x208] sm:$0xff]  ;;  %v81_v12 = vld [vmem:[%s696_s1 + $0x200] sm:$0xff] }
  0x24   :  { %386 = vmatpush3.msra.mxu1 %v49_v0  ;;  %227 = vmatprep.mubr.f32.mxu1 %v15_v1  ;;  %v16_v13 = vld [vmem:[%s695_s0 + $0x20] sm:$0xff]  ;;  %s421_s0 = scalar_lea.vmem %s312_s24, 128 }
  0x25   :  { %158 = vmatmul.mubr.f32.vlgmr.msra.gmra.mxu0 %v12_v2  ;;  %228 = vmatmul.mubr.f32.vlgmr.msra.gmra.mxu1 %v14_v3  ;;  %p422_p0 = scmp.ne.s32.totalorder %s312_s24, %s421_s0  ;;  %p427_p2 = scmp.lt.s32.totalorder %s421_s0, %s421_s0 }
  0x26   :  { %399 = vmatprep.subr.mxu0 %v443_v5  ;;  %415 = vmatprep.mubr.msk.f32.mxu0 %vm444_vm0, %v443_v5 }
  0x27   :  { %400 = vmatpush3.msra.mxu0 %v88_v4  ;;  %p428_p3 = por %p427_p2, %p426_p1 }
  0x28   :  { %401 = vmatprep.subr.mxu0 %v443_v5 }
  0x29   :  { %402 = vmatpush3.msra.mxu0 %v87_v6  ;;  %p429_p4 = pnand %p428_p3, %p422_p0 }
  0x2a   :  { %403 = vmatprep.subr.mxu0 %v443_v5 }
  0x2b   :  { %404 = vmatpush3.msra.mxu0 %v86_v7 }
  0x2c   :  { %405 = vmatprep.subr.mxu0 %v443_v5 }
  0x2d   :  { %406 = vmatpush3.msra.mxu0 %v85_v8 }
  0x2e   :  { %407 = vmatprep.subr.mxu0 %v443_v5 }
  0x2f   :  { %408 = vmatpush3.msra.mxu0 %v84_v9 }
  0x30   :  { %409 = vmatprep.subr.mxu0 %v443_v5 }
  0x31   :  { %410 = vmatpush3.msra.mxu0 %v83_v10 }
  0x32   :  { %411 = vmatprep.subr.mxu0 %v443_v5 }
  0x33   :  { %412 = vmatpush3.msra.mxu0 %v82_v11 }
  0x34   :  { %413 = vmatprep.subr.mxu0 %v443_v5 }
  0x35   :  { %414 = vmatpush3.msra.mxu0 %v81_v12 }
  0x36   :  { %416 = vmatmul.mubr.msk.f32.vlgmr.msra.gmra.mxu0 %vm89_vm1, %v16_v13 }
  0xe5   :  { %v352_v14 = vpop.f32.mrf.mxu0  ;;  %v387_v15 = vpop.f32.mrf.mxu1 }
  0xe7   :  { %v353_v16 = vpop.f32.mrf.mxu0  ;;  %v388_v17 = vpop.f32.mrf.mxu1 }
  0xe8   :  { %v354_v18 = vadd.f32 %v353_v16, %v352_v14  ;;  %v389_v19 = vadd.f32 %v388_v17, %v387_v15 }
  0xea   :  { %v230_v20 = vadd.f32 %v389_v19, %v354_v18 }
  0xf6   :  { %v299_v21 = vpop.f32.mrf.mxu0 }
  0xf7   :  { %v300_v22 = vadd.f32 %v299_v21, %v230_v20 }
  0xf8   :  { %v417_v23 = vpop.f32.mrf.mxu0 }
  0xf9   :  { %304 = vst.msk [vmem:[#allocation2] sm:$0xff] %vm303_vm2, %v300_v22 }
  0xfa   :  { %432 = shalt.err (!%p429_p4)
}
  0xfb   :  { %314 = dma.vmem_to_hbm [thread:$0]  %s312_s24, 128, %s697_s2, [#allocation3]  }
  0xfc   :  { %441 = dma.done.wait [#allocation3], 128  }
  0xfd   :  { %442 = vsyncadd [#allocation3], 4294967168 }
  0xfe   :  { %318 = vsyncpa [#allocation3], 1 }

</bundles_post_ra>
